<compile_context>
chip_gen: v7x
topology: tpu7x:2x2x1
jax: 0.10.0
libtpu: 0.0.40
codegen_flags: <defaults>
</compile_context>

<pallas_src>
import functools

import jax
import jax.numpy as jnp
from jax.experimental import pallas as pl
from jax.experimental.pallas import tpu as pltpu


_LANE = 128    # hard lane constraint on the last block dim
_ALIGN = 256   # MXU-friendly alignment (2x256x256 MXU on v6e/v7x; legal on v5e)


def _round_up(x, m):
    return (x + m - 1) // m * m


def _cdiv(a, b):
    return -(-a // b)


def _mlp_head_kernel(x_ref, w1_ref, b1_ref, w2_ref, b2_ref, o_ref, h_ref):
    """grid = (heads, row_tiles, vocab_tiles).

    On the first vocab tile of each (head, row-tile) the hidden activation
    h = relu(x @ W1 + b1) is computed once into VMEM scratch (f32 math, stored
    in the compute dtype).  Every vocab tile then streams its own W2/b2 slice
    and writes one lane-dense output block.  Both matmuls accumulate in f32.
    """
    @pl.when(pl.program_id(2) == 0)
    def _():
        h = jnp.dot(x_ref[...], w1_ref[...], preferred_element_type=jnp.float32)
        h = jnp.maximum(h + b1_ref[...].astype(jnp.float32), 0.0)
        h_ref[...] = h.astype(h_ref.dtype)

    out = jnp.dot(h_ref[...], w2_ref[...], preferred_element_type=jnp.float32)
    o_ref[...] = (out + b2_ref[...].astype(jnp.float32)).astype(o_ref.dtype)


def _run_heads(x_s, w1_s, b1_s, w2_s, b2_s, *, tm, tn, out_dtype, vmem_limit):
    """One pallas_call over G stacked heads sharing identical padded shapes."""
    g, np_rows, hp = x_s.shape
    vp = w2_s.shape[-1]
    grid = (g, np_rows // tm, vp // tn)

    cdt_size = jnp.dtype(x_s.dtype).itemsize
    out_size = jnp.dtype(out_dtype).itemsize
    flops = 2 * g * np_rows * hp * (hp + vp)
    bytes_accessed = int(
        g * np_rows * hp * cdt_size                      # x
        + g * (hp * hp + hp * vp + hp + vp) * cdt_size   # weights / biases
        + g * np_rows * vp * out_size)                   # logits

    return pl.pallas_call(
        _mlp_head_kernel,
        out_shape=jax.ShapeDtypeStruct((g, np_rows, vp), out_dtype),
        grid_spec=pltpu.PrefetchScalarGridSpec(
            num_scalar_prefetch=0,
            grid=grid,
            in_specs=[
                pl.BlockSpec((None, tm, hp), lambda h, i, j: (h, i, 0)),   # x row tile
                pl.BlockSpec((None, hp, hp), lambda h, i, j: (h, 0, 0)),   # W1 (head-resident)
                pl.BlockSpec((None, 1, hp), lambda h, i, j: (h, 0, 0)),    # b1
                pl.BlockSpec((None, hp, tn), lambda h, i, j: (h, 0, j)),   # W2 vocab stream
                pl.BlockSpec((None, 1, tn), lambda h, i, j: (h, 0, j)),    # b2 vocab stream
            ],
            out_specs=pl.BlockSpec((None, tm, tn), lambda h, i, j: (h, i, j)),
            scratch_shapes=[pltpu.VMEM((tm, hp), x_s.dtype)],              # h = relu(xW1+b1)
        ),
        compiler_params=pltpu.CompilerParams(
            # Vocab axis must stay sequential: the h scratch is reused across it.
            dimension_semantics=("parallel", "parallel", "arbitrary"),
            vmem_limit_bytes=vmem_limit),
        cost_estimate=pl.CostEstimate(flops=flops, transcendentals=0,
                                      bytes_accessed=bytes_accessed),
    )(x_s, w1_s, b1_s, w2_s, b2_s)


class SelfPredictParams:
    """Deterministic synthetic parameters for SelfPredict (torch Linear init)."""

    def __init__(self, key, hidden_size, dx_voc_size, rx_voc_size, dtype=jnp.float32):
        keys = jax.random.split(key, 8)

        def linear(kw, kb, fan_in, fan_out):
            bound = 1.0 / jnp.sqrt(jnp.float32(fan_in))
            w = jax.random.uniform(kw, (fan_in, fan_out), dtype, -bound, bound)
            b = jax.random.uniform(kb, (fan_out,), dtype, -bound, bound)
            return w, b

        # predict_dx: Linear(H,H) -> ReLU -> Linear(H, dx_voc)
        self.dx_w1, self.dx_b1 = linear(keys[0], keys[1], hidden_size, hidden_size)
        self.dx_w2, self.dx_b2 = linear(keys[2], keys[3], hidden_size, dx_voc_size)
        # predict_rx: Linear(H,H) -> ReLU -> Linear(H, rx_voc)
        self.rx_w1, self.rx_b1 = linear(keys[4], keys[5], hidden_size, hidden_size)
        self.rx_w2, self.rx_b2 = linear(keys[6], keys[7], hidden_size, rx_voc_size)


def self_predict(params: SelfPredictParams, dx_inputs, rx_inputs, *,
                 row_tile=512, vocab_tile=1024, compute_dtype=jnp.bfloat16):
    """SelfPredict.forward: returns (dx_logits, rx_logits). Inputs [..., hidden]."""
    assert dx_inputs.shape == rx_inputs.shape, "dx/rx inputs must share a shape"
    lead = dx_inputs.shape[:-1]
    hidden = dx_inputs.shape[-1]
    dx_voc = params.dx_w2.shape[-1]
    rx_voc = params.rx_w2.shape[-1]
    out_dtype = dx_inputs.dtype

    n = 1
    for d in lead:
        n *= d

    hp = _round_up(hidden, _ALIGN)
    vocab_tile = _round_up(vocab_tile, _ALIGN)

    # Balanced row tile: minimizes tail-row padding (multiple of 8 sublanes).
    n_row_tiles = _cdiv(n, row_tile)
    tm = _round_up(_cdiv(n, n_row_tiles), 8)

    # Per-head vocab tiling (padded vocab is an exact multiple of its tile).
    def voc_tiles(voc):
        tn = min(_round_up(voc, _ALIGN), vocab_tile)
        return tn, _round_up(voc, tn)

    tn_dx, vp_dx = voc_tiles(dx_voc)
    tn_rx, vp_rx = voc_tiles(rx_voc)
    tn_max = max(tn_dx, tn_rx)

    # VMEM budget: ~70% of physical capacity for this generation; shrink the
    # row tile until the estimated working set fits.
    try:
        vmem_cap = int(pltpu.get_tpu_info().vmem_capacity_bytes)
    except Exception:
        vmem_cap = 64 << 20                       # conservative fallback (v7x per-TC)
    vmem_budget = int(vmem_cap * 0.7)

    cdt_size = jnp.dtype(compute_dtype).itemsize
    out_size = jnp.dtype(out_dtype).itemsize

    def vmem_est(tm_):
        return (2 * hp * hp * cdt_size            # W1 (default double-buffered)
                + 2 * 8 * hp * cdt_size           # b1 (sublane-padded)
                + 2 * hp * tn_max * cdt_size      # W2 stream block
                + 2 * 8 * tn_max * cdt_size       # b2 stream block
                + 2 * tm_ * hp * cdt_size         # x row tile
                + 2 * tm_ * tn_max * out_size     # output tile
                + tm_ * hp * cdt_size)            # h scratch

    while vmem_est(tm) > vmem_budget and tm > 8:
        tm = max(8, _round_up(tm // 2, 8))
    np_rows = _round_up(n, tm)
    vmem_limit = int(min(vmem_budget, max(2 * vmem_est(tm), 8 << 20)))

    def pad_x(x):
        x2 = x.reshape(n, hidden)
        x2 = jnp.pad(x2, ((0, np_rows - n), (0, hp - hidden)))
        return x2.astype(compute_dtype)

    def pad_head(w1, b1, w2, b2, vp):
        w1p = jnp.pad(w1, ((0, hp - hidden), (0, hp - hidden))).astype(compute_dtype)
        b1p = jnp.pad(b1, (0, hp - hidden)).astype(compute_dtype).reshape(1, hp)
        w2p = jnp.pad(w2, ((0, hp - hidden), (0, vp - w2.shape[-1]))).astype(compute_dtype)
        b2p = jnp.pad(b2, (0, vp - b2.shape[-1])).astype(compute_dtype).reshape(1, vp)
        return w1p, b1p, w2p, b2p

    x_dx = pad_x(dx_inputs)
    x_rx = pad_x(rx_inputs)
    dx_p = pad_head(params.dx_w1, params.dx_b1, params.dx_w2, params.dx_b2, vp_dx)
    rx_p = pad_head(params.rx_w1, params.rx_b1, params.rx_w2, params.rx_b2, vp_rx)

    if vp_dx == vp_rx and tn_dx == tn_rx:
        # Identical padded vocab widths -> fuse both heads into one pallas_call
        # (halves launch / pipeline overhead, no wasted padded columns).
        out = _run_heads(
            jnp.stack([x_dx, x_rx]),
            jnp.stack([dx_p[0], rx_p[0]]), jnp.stack([dx_p[1], rx_p[1]]),
            jnp.stack([dx_p[2], rx_p[2]]), jnp.stack([dx_p[3], rx_p[3]]),
            tm=tm, tn=tn_dx, out_dtype=out_dtype, vmem_limit=vmem_limit)
        dx_out, rx_out = out[0], out[1]
    else:
        # Asymmetric vocabularies: separate calls so the small head never pays
        # MXU / HBM cost for the big head's zero-padded vocab columns.
        dx_out = _run_heads(x_dx[None], dx_p[0][None], dx_p[1][None],
                            dx_p[2][None], dx_p[3][None],
                            tm=tm, tn=tn_dx, out_dtype=out_dtype,
                            vmem_limit=vmem_limit)[0]
        rx_out = _run_heads(x_rx[None], rx_p[0][None], rx_p[1][None],
                            rx_p[2][None], rx_p[3][None],
                            tm=tm, tn=tn_rx, out_dtype=out_dtype,
                            vmem_limit=vmem_limit)[0]

    dx_logits = dx_out[:n, :dx_voc].reshape(*lead, dx_voc)
    rx_logits = rx_out[:n, :rx_voc].reshape(*lead, rx_voc)
    return dx_logits, rx_logits


# --- pure-JAX references ----------------------------------------------------

def _ref_mlp_f32(x, w1, b1, w2, b2):
    return jnp.maximum(x @ w1 + b1, 0.0) @ w2 + b2


def _ref_mlp_matched(x, w1, b1, w2, b2, dt):
    """Same op sequence / dtypes as the kernel (bf16 inputs, f32 accumulate)."""
    xc, w1c, w2c = x.astype(dt), w1.astype(dt), w2.astype(dt)
    b1c = b1.astype(dt).astype(jnp.float32)
    b2c = b2.astype(dt).astype(jnp.float32)
    h = jnp.maximum(jnp.dot(xc, w1c, preferred_element_type=jnp.float32) + b1c, 0.0)
    return jnp.dot(h.astype(dt), w2c, preferred_element_type=jnp.float32) + b2c


if __name__ == "__main__":
    batch, seq, hidden = 2, 8, 32
    dx_voc, rx_voc = 24, 40

    key = jax.random.PRNGKey(0)
    k_params, k_dx, k_rx, k_params2 = jax.random.split(key, 4)

    params = SelfPredictParams(k_params, hidden, dx_voc, rx_voc)
    dx_inputs = jax.random.normal(k_dx, (batch, seq, hidden), jnp.float32)
    rx_inputs = jax.random.normal(k_rx, (batch, seq, hidden), jnp.float32)

    # --- config 1: symmetric padded vocabs -> fused single pallas_call ------
    fwd = jax.jit(functools.partial(self_predict, params))
    dx_logits, rx_logits = fwd(dx_inputs, rx_inputs)
    jax.block_until_ready((dx_logits, rx_logits))

    assert dx_logits.shape == (batch, seq, dx_voc)
    assert rx_logits.shape == (batch, seq, rx_voc)

    dt = jnp.bfloat16
    dx_m = _ref_mlp_matched(dx_inputs, params.dx_w1, params.dx_b1,
                            params.dx_w2, params.dx_b2, dt)
    rx_m = _ref_mlp_matched(rx_inputs, params.rx_w1, params.rx_b1,
                            params.rx_w2, params.rx_b2, dt)
    assert jnp.allclose(dx_logits, dx_m, atol=1e-2, rtol=1e-2)
    assert jnp.allclose(rx_logits, rx_m, atol=1e-2, rtol=1e-2)

    dx_f = _ref_mlp_f32(dx_inputs, params.dx_w1, params.dx_b1,
                        params.dx_w2, params.dx_b2)
    rx_f = _ref_mlp_f32(rx_inputs, params.rx_w1, params.rx_b1,
                        params.rx_w2, params.rx_b2)
    assert jnp.allclose(dx_logits, dx_f, atol=5e-2, rtol=5e-2)
    assert jnp.allclose(rx_logits, rx_f, atol=5e-2, rtol=5e-2)

    # --- config 2: asymmetric vocabs + multiple row/vocab tiles -------------
    # Exercises the per-head (unfused) path, multi-row-tile grid and the
    # W2/b2 vocab-streaming path with scratch reuse across vocab tiles.
    dx_voc2, rx_voc2 = 24, 300
    params2 = SelfPredictParams(k_params2, hidden, dx_voc2, rx_voc2)
    fwd2 = jax.jit(functools.partial(self_predict, params2,
                                     row_tile=8, vocab_tile=256))
    dx2, rx2 = fwd2(dx_inputs, rx_inputs)
    jax.block_until_ready((dx2, rx2))

    assert dx2.shape == (batch, seq, dx_voc2)
    assert rx2.shape == (batch, seq, rx_voc2)
    dx2_m = _ref_mlp_matched(dx_inputs, params2.dx_w1, params2.dx_b1,
                             params2.dx_w2, params2.dx_b2, dt)
    rx2_m = _ref_mlp_matched(rx_inputs, params2.rx_w1, params2.rx_b1,
                             params2.rx_w2, params2.rx_b2, dt)
    assert jnp.allclose(dx2, dx2_m, atol=1e-2, rtol=1e-2)
    assert jnp.allclose(rx2, rx2_m, atol=1e-2, rtol=1e-2)

    print("KERNEL_OK")
</pallas_src>

<mosaic_0001>
module attributes {stable_mosaic.version = 11 : i64} {
  func.func @_mlp_head_kernel(%arg0: i32, %arg1: i32, %arg2: i32, %arg3: memref<1x16x256xbf16, #tpu.memory_space<vmem>>, %arg4: memref<1x256x256xbf16, #tpu.memory_space<vmem>>, %arg5: memref<1x1x256xbf16, #tpu.memory_space<vmem>>, %arg6: memref<1x256x256xbf16, #tpu.memory_space<vmem>>, %arg7: memref<1x1x256xbf16, #tpu.memory_space<vmem>>, %arg8: memref<1x16x256xf32, #tpu.memory_space<vmem>>, %arg9: memref<16x256xbf16, #tpu.memory_space<vmem>>) attributes {dimension_semantics = [#tpu.dimension_semantics<parallel>, #tpu.dimension_semantics<parallel>, #tpu.dimension_semantics<arbitrary>], iteration_bounds = array<i64: 2, 1, 1>, scalar_prefetch = 0 : i64, scratch_operands = 1 : i64, tpu.core_type = #tpu.core_type<tc>, window_params = [{transform_indices = @transform_0, window_bounds = array<i64: 1, 16, 256>}, {transform_indices = @transform_1, window_bounds = array<i64: 1, 256, 256>}, {transform_indices = @transform_2, window_bounds = array<i64: 1, 1, 256>}, {transform_indices = @transform_3, window_bounds = array<i64: 1, 256, 256>}, {transform_indices = @transform_4, window_bounds = array<i64: 1, 1, 256>}, {transform_indices = @transform_5, window_bounds = array<i64: 1, 16, 256>}]} {
    %c0_i32 = arith.constant 0 : i32
    %0 = arith.cmpi eq, %arg2, %c0_i32 : i32
    %1 = arith.extui %0 : i1 to i32
    %c0_i32_0 = arith.constant 0 : i32
    %2 = arith.cmpi ne, %1, %c0_i32_0 : i32
    scf.if %2 {
      %c0_11 = arith.constant 0 : index
      %c0_12 = arith.constant 0 : index
      %c0_13 = arith.constant 0 : index
      %15 = vector.load %arg3[%c0_11, %c0_12, %c0_13] : memref<1x16x256xbf16, #tpu.memory_space<vmem>>, vector<1x16x256xbf16>
      %16 = vector.shape_cast %15 : vector<1x16x256xbf16> to vector<16x256xbf16>
      %c0_14 = arith.constant 0 : index
      %c0_15 = arith.constant 0 : index
      %c0_16 = arith.constant 0 : index
      %17 = vector.load %arg4[%c0_14, %c0_15, %c0_16] : memref<1x256x256xbf16, #tpu.memory_space<vmem>>, vector<1x256x256xbf16>
      %18 = vector.shape_cast %17 : vector<1x256x256xbf16> to vector<256x256xbf16>
      %cst_17 = arith.constant dense<0.000000e+00> : vector<16x256xf32>
      %19 = tpu.matmul %16, %18, %cst_17 {dimension_numbers = #tpu.dot_dimension_numbers<[1], [0], [0], [1], [0, 0, 1, 1], [], []>} : vector<16x256xbf16>, vector<256x256xbf16>, vector<16x256xf32> -> vector<16x256xf32>
      %c0_18 = arith.constant 0 : index
      %c0_19 = arith.constant 0 : index
      %c0_20 = arith.constant 0 : index
      %20 = vector.load %arg5[%c0_18, %c0_19, %c0_20] : memref<1x1x256xbf16, #tpu.memory_space<vmem>>, vector<1x1x256xbf16>
      %21 = vector.shape_cast %20 : vector<1x1x256xbf16> to vector<1x256xbf16>
      %22 = arith.extf %21 : vector<1x256xbf16> to vector<1x256xf32>
      %23 = vector.broadcast %22 : vector<1x256xf32> to vector<16x256xf32>
      %24 = arith.addf %19, %23 : vector<16x256xf32>
      %cst_21 = arith.constant 0.000000e+00 : f32
      %25 = vector.broadcast %cst_21 : f32 to vector<16x256xf32>
      %26 = arith.maximumf %24, %25 : vector<16x256xf32>
      %27 = arith.truncf %26 : vector<16x256xf32> to vector<16x256xbf16>
      %c0_22 = arith.constant 0 : index
      %c0_23 = arith.constant 0 : index
      %28 = vector.load %arg9[%c0_22, %c0_23] : memref<16x256xbf16, #tpu.memory_space<vmem>>, vector<16x256xbf16>
      tpu.vector_store %arg9[%c0_22, %c0_23], %27 {strides = array<i32>} : memref<16x256xbf16, #tpu.memory_space<vmem>>, vector<16x256xbf16>,
    } else {
    }
    %c0 = arith.constant 0 : index
    %c0_1 = arith.constant 0 : index
    %3 = vector.load %arg9[%c0, %c0_1] : memref<16x256xbf16, #tpu.memory_space<vmem>>, vector<16x256xbf16>
    %c0_2 = arith.constant 0 : index
    %c0_3 = arith.constant 0 : index
    %c0_4 = arith.constant 0 : index
    %4 = vector.load %arg6[%c0_2, %c0_3, %c0_4] : memref<1x256x256xbf16, #tpu.memory_space<vmem>>, vector<1x256x256xbf16>
    %5 = vector.shape_cast %4 : vector<1x256x256xbf16> to vector<256x256xbf16>
    %cst = arith.constant dense<0.000000e+00> : vector<16x256xf32>
    %6 = tpu.matmul %3, %5, %cst {dimension_numbers = #tpu.dot_dimension_numbers<[1], [0], [0], [1], [0, 0, 1, 1], [], []>} : vector<16x256xbf16>, vector<256x256xbf16>, vector<16x256xf32> -> vector<16x256xf32>
    %c0_5 = arith.constant 0 : index
    %c0_6 = arith.constant 0 : index
    %c0_7 = arith.constant 0 : index
    %7 = vector.load %arg7[%c0_5, %c0_6, %c0_7] : memref<1x1x256xbf16, #tpu.memory_space<vmem>>, vector<1x1x256xbf16>
    %8 = vector.shape_cast %7 : vector<1x1x256xbf16> to vector<1x256xbf16>
    %9 = arith.extf %8 : vector<1x256xbf16> to vector<1x256xf32>
    %10 = vector.broadcast %9 : vector<1x256xf32> to vector<16x256xf32>
    %11 = arith.addf %6, %10 : vector<16x256xf32>
    %c0_8 = arith.constant 0 : index
    %c0_9 = arith.constant 0 : index
    %c0_10 = arith.constant 0 : index
    %12 = vector.load %arg8[%c0_8, %c0_9, %c0_10] : memref<1x16x256xf32, #tpu.memory_space<vmem>>, vector<1x16x256xf32>
    %13 = vector.shape_cast %12 : vector<1x16x256xf32> to vector<16x256xf32>
    %14 = vector.shape_cast %11 : vector<16x256xf32> to vector<1x16x256xf32>
    tpu.vector_store %arg8[%c0_8, %c0_9, %c0_10], %14 {strides = array<i32>} : memref<1x16x256xf32, #tpu.memory_space<vmem>>, vector<1x16x256xf32>,
    return
  }
  func.func @transform_0(%arg0: i32, %arg1: i32, %arg2: i32) -> (i32, i32, i32) {
    %c0_i32 = arith.constant 0 : i32
    %c0_i32_0 = arith.constant 0 : i32
    return %arg0, %arg1, %c0_i32 : i32, i32, i32
  }
  func.func @transform_1(%arg0: i32, %arg1: i32, %arg2: i32) -> (i32, i32, i32) {
    %c0_i32 = arith.constant 0 : i32
    %c0_i32_0 = arith.constant 0 : i32
    %c0_i32_1 = arith.constant 0 : i32
    return %arg0, %c0_i32, %c0_i32_0 : i32, i32, i32
  }
  func.func @transform_2(%arg0: i32, %arg1: i32, %arg2: i32) -> (i32, i32, i32) {
    %c0_i32 = arith.constant 0 : i32
    %c0_i32_0 = arith.constant 0 : i32
    %c0_i32_1 = arith.constant 0 : i32
    return %arg0, %c0_i32, %c0_i32_0 : i32, i32, i32
  }
  func.func @transform_3(%arg0: i32, %arg1: i32, %arg2: i32) -> (i32, i32, i32) {
    %c0_i32 = arith.constant 0 : i32
    %c0_i32_0 = arith.constant 0 : i32
    return %arg0, %c0_i32, %arg2 : i32, i32, i32
  }
  func.func @transform_4(%arg0: i32, %arg1: i32, %arg2: i32) -> (i32, i32, i32) {
    %c0_i32 = arith.constant 0 : i32
    %c0_i32_0 = arith.constant 0 : i32
    return %arg0, %c0_i32, %arg2 : i32, i32, i32
  }
  func.func @transform_5(%arg0: i32, %arg1: i32, %arg2: i32) -> (i32, i32, i32) {
    %c0_i32 = arith.constant 0 : i32
    return %arg0, %arg1, %arg2 : i32, i32, i32
  }
}

</mosaic_0001>

<bundles_post_ra>
// kernel: self_predict.1
= control target key start
LH: loop header
LB: loop body
LE: loop exit
PB: predicated region body
PF: predicated region fallthrough
CT: control target
= control target key end

     0   :  { %s1368_s18 = smov 0   ;;  %s1370_s19 = smov 0   ;;  %s1491_s0 = inlined_call_operand.vmem [shape: bf16[2,16,256], index: 0, kind: input, shape index: {}]   ;;  %s1492_s1 = inlined_call_operand.vmem [shape: bf16[2,256,256], index: 1, kind: input, shape index: {}]   ;;  %s1493_s2 = inlined_call_operand.vmem [shape: bf16[2,1,256], index: 2, kind: input, shape index: {}]   ;;  %s1494_s3 = inlined_call_operand.vmem [shape: bf16[2,256,256], index: 3, kind: input, shape index: {}]   ;;  %s1495_s4 = inlined_call_operand.vmem [shape: bf16[2,1,256], index: 4, kind: input, shape index: {}]   ;;  %s1496_s5 = inlined_call_operand.vmem [shape: f32[2,16,256], index: 5, kind: output, shape index: {}]  }
   0x1   :  { %s1372_s20 = smov 0  }
   0x2 LB: > { %s34_s21 = sadd.s32 1, %s1332_s19  ;;  %p1108_p0 = scmp.ge.s32.totalorder %s1336_s20, 1  ;;  %s1336_s20 = sphi %s1372_s20, %s15_s20   ;;  %s1332_s19 = sphi %s1370_s19, %s1498_s19   ;;  %s1328_s18 = sphi %s1368_s18, %s1497_s18  }
   0x3   : > { %p36_p1 = scmp.ge.s32.totalorder %s34_s21, 2  ;;  %p270_p2 = scmp.lt.s32.totalorder %s1336_s20, 3 }
   0x5   : > { %s1500_s21 = smov (%p36_p1, %s34_s21), 0  ;;  %p271_p3 = pnand %p1108_p0, %p270_p2 }
   0x6   : > { %p339_p4 = scmp.lt.s32.totalorder (!%p271_p3), %s1328_s18, 1 }
   0x7   : > { %274 = sbr.rel (%p271_p3) target bundleno = 522 (0x20a), region = 40 }
   0xe   : > { %s1502_s18 = smov (!%p339_p4, %s1328_s18), 1 }
   0xf   : > { %s1188_s22 = sshll.u32 %s1502_s18, 8  ;;  %s1187_s26 = sshll.u32 %s1502_s18, 4 }
  0x10   : > { %s1392_s25 = scalar_lea.vmem %s1492_s1, %s1188_s22  ;;  %s1410_s29 = scalar_lea.vmem %s1491_s0, %s1187_s26 }
  0x11   : > { %v1215_v0 = vld [vmem:[%s1392_s25 + $0x4] ss:$8 sps:$4 sm:$0xff]   ;;  %v1217_v1 = vld [vmem:[%s1392_s25] ss:$8 sps:$4 sm:$0xff]   ;;  %v1218_v2 = vld [vmem:[%s1392_s25 + $0x14] ss:$8 sps:$4 sm:$0xff]   ;;  %s1416_s7 = scalar_lea.vmem %s1494_s3, %s1188_s22 }
  0x12   : > { %622 = vmatprep.subr.bf16.mxu0 %v1215_v0  ;;  %v1220_v3 = vld [vmem:[%s1392_s25 + $0x10] ss:$8 sps:$4 sm:$0xff]   ;;  %v1221_v4 = vld [vmem:[%s1392_s25 + $0x24] ss:$8 sps:$4 sm:$0xff]   ;;  %v1223_v5 = vld [vmem:[%s1392_s25 + $0x20] ss:$8 sps:$4 sm:$0xff]  }
  0x13   : > { %623 = vmatpush1.bf16.msra.mxu0 %v1217_v1  ;;  %v1224_v6 = vld [vmem:[%s1392_s25 + $0x34] ss:$8 sps:$4 sm:$0xff]   ;;  %v1226_v7 = vld [vmem:[%s1392_s25 + $0x30] ss:$8 sps:$4 sm:$0xff]   ;;  %v1227_v8 = vld [vmem:[%s1392_s25 + $0x44] ss:$8 sps:$4 sm:$0xff]  }
  0x14   : > { %624 = vmatprep.subr.bf16.mxu0 %v1218_v2  ;;  %v1229_v9 = vld [vmem:[%s1392_s25 + $0x40] ss:$8 sps:$4 sm:$0xff]   ;;  %v1230_v10 = vld [vmem:[%s1392_s25 + $0x54] ss:$8 sps:$4 sm:$0xff]   ;;  %v1232_v11 = vld [vmem:[%s1392_s25 + $0x50] ss:$8 sps:$4 sm:$0xff]   ;;  %v434_v2 = vlaneseq }
  0x15   : > { %v1233_v12 = vld [vmem:[%s1392_s25 + $0x64] ss:$8 sps:$4 sm:$0xff]   ;;  %v1235_v13 = vld [vmem:[%s1392_s25 + $0x60] ss:$8 sps:$4 sm:$0xff]   ;;  %v1236_v14 = vld [vmem:[%s1392_s25 + $0x74] ss:$8 sps:$4 sm:$0xff]  }
  0x16   : > { %v1265_v15 = vld [vmem:[%s1410_s29 + $0x4] ss:$8 sps:$4 sm:$0xff]   ;;  %v1268_v17 = vld [vmem:[%s1416_s7] ss:$8 sps:$4 sm:$0xff]   ;;  %v1269_v18 = vld [vmem:[%s1416_s7 + $0x14] ss:$8 sps:$4 sm:$0xff]  }
  0x17   : > { %625 = vmatpush1.bf16.msra.mxu0 %v1220_v3  ;;  %v1266_v16 = vld [vmem:[%s1416_s7 + $0x4] ss:$8 sps:$4 sm:$0xff]   ;;  %654 = vmatprep.mubr.bf16.mxu0 %v1265_v15  ;;  %v1271_v19 = vld [vmem:[%s1416_s7 + $0x10] ss:$8 sps:$4 sm:$0xff]   ;;  %v1274_v23 = vld [vmem:[%s1416_s7 + $0x20] ss:$8 sps:$4 sm:$0xff]  }
  0x18   : > { %626 = vmatprep.subr.bf16.mxu0 %v1221_v4  ;;  %888 = vmatprep.subr.bf16.mxu1 %v1266_v16  ;;  %v1238_v20 = vld [vmem:[%s1392_s25 + $0x70] ss:$8 sps:$4 sm:$0xff]   ;;  %v1272_v21 = vld [vmem:[%s1416_s7 + $0x24] ss:$8 sps:$4 sm:$0xff]   ;;  %v1241_v24 = vld [vmem:[%s1392_s25 + $0x80] ss:$8 sps:$4 sm:$0xff]  }
  0x19   : > { %889 = vmatpush1.bf16.msra.mxu1 %v1268_v17  ;;  %v1239_v22 = vld [vmem:[%s1392_s25 + $0x84] ss:$8 sps:$4 sm:$0xff]   ;;  %v1275_v25 = vld [vmem:[%s1416_s7 + $0x34] ss:$8 sps:$4 sm:$0xff]   ;;  %v1277_v27 = vld [vmem:[%s1416_s7 + $0x30] ss:$8 sps:$4 sm:$0xff]  }
  0x1a   : > { %890 = vmatprep.subr.bf16.mxu1 %v1269_v18  ;;  %v1242_v26 = vld [vmem:[%s1392_s25 + $0x94] ss:$8 sps:$4 sm:$0xff]   ;;  %v1244_v28 = vld [vmem:[%s1392_s25 + $0x90] ss:$8 sps:$4 sm:$0xff]   ;;  %v1278_v29 = vld [vmem:[%s1416_s7 + $0x44] ss:$8 sps:$4 sm:$0xff]  }
  0x1b   : > { %627 = vmatpush1.bf16.msra.mxu0 %v1223_v5  ;;  %v1245_v30 = vld [vmem:[%s1392_s25 + $0xa4] ss:$8 sps:$4 sm:$0xff]   ;;  %v1280_v31 = vld [vmem:[%s1416_s7 + $0x40] ss:$8 sps:$4 sm:$0xff]   ;;  %v1281_v33 = vld [vmem:[%s1416_s7 + $0x54] ss:$8 sps:$4 sm:$0xff]  }
  0x1c   : > { %628 = vmatprep.subr.bf16.mxu0 %v1224_v6  ;;  %v1247_v32 = vld [vmem:[%s1392_s25 + $0xa0] ss:$8 sps:$4 sm:$0xff]   ;;  %v1248_v34 = vld [vmem:[%s1392_s25 + $0xb4] ss:$8 sps:$4 sm:$0xff]   ;;  %v1283_v35 = vld [vmem:[%s1416_s7 + $0x50] ss:$8 sps:$4 sm:$0xff]  }
  0x1d   : > { %891 = vmatpush1.bf16.msra.mxu1 %v1271_v19  ;;  %v1250_v36 = vld [vmem:[%s1392_s25 + $0xb0] ss:$8 sps:$4 sm:$0xff]   ;;  %v1284_v37 = vld [vmem:[%s1416_s7 + $0x64] ss:$8 sps:$4 sm:$0xff]   ;;  %v1286_v39 = vld [vmem:[%s1416_s7 + $0x60] ss:$8 sps:$4 sm:$0xff]  }
  0x1e   : > { %892 = vmatprep.subr.bf16.mxu1 %v1272_v21  ;;  %v1251_v38 = vld [vmem:[%s1392_s25 + $0xc4] ss:$8 sps:$4 sm:$0xff]   ;;  %v1253_v40 = vld [vmem:[%s1392_s25 + $0xc0] ss:$8 sps:$4 sm:$0xff]   ;;  %v1287_v41 = vld [vmem:[%s1416_s7 + $0x74] ss:$8 sps:$4 sm:$0xff]  }
  0x1f   : > { %629 = vmatpush1.bf16.msra.mxu0 %v1226_v7  ;;  %v1254_v42 = vld [vmem:[%s1392_s25 + $0xd4] ss:$8 sps:$4 sm:$0xff]   ;;  %v1289_v43 = vld [vmem:[%s1416_s7 + $0x70] ss:$8 sps:$4 sm:$0xff]   ;;  %v1290_v45 = vld [vmem:[%s1416_s7 + $0x84] ss:$8 sps:$4 sm:$0xff]  }
  0x20   : > { %630 = vmatprep.subr.bf16.mxu0 %v1227_v8  ;;  %v1256_v44 = vld [vmem:[%s1392_s25 + $0xd0] ss:$8 sps:$4 sm:$0xff]   ;;  %v1257_v46 = vld [vmem:[%s1392_s25 + $0xe4] ss:$8 sps:$4 sm:$0xff]   ;;  %v1292_v47 = vld [vmem:[%s1416_s7 + $0x80] ss:$8 sps:$4 sm:$0xff]  }
  0x21   : > { %893 = vmatpush1.bf16.msra.mxu1 %v1274_v23  ;;  %v1259_v48 = vld [vmem:[%s1392_s25 + $0xe0] ss:$8 sps:$4 sm:$0xff]   ;;  %v1293_v49 = vld [vmem:[%s1416_s7 + $0x94] ss:$8 sps:$4 sm:$0xff]   ;;  %v1295_v51 = vld [vmem:[%s1416_s7 + $0x90] ss:$8 sps:$4 sm:$0xff]  }
  0x22   : > { %894 = vmatprep.subr.bf16.mxu1 %v1275_v25  ;;  %v1260_v50 = vld [vmem:[%s1392_s25 + $0xf4] ss:$8 sps:$4 sm:$0xff]   ;;  %v1262_v52 = vld [vmem:[%s1392_s25 + $0xf0] ss:$8 sps:$4 sm:$0xff]   ;;  %v1296_v53 = vld [vmem:[%s1416_s7 + $0xa4] ss:$8 sps:$4 sm:$0xff]  }
  0x23   : > { %631 = vmatpush1.bf16.msra.mxu0 %v1229_v9  ;;  %v1263_v54 = vld [vmem:[%s1410_s29] ss:$8 sps:$4 sm:$0xff]   ;;  %v1299_v56 = vld [vmem:[%s1416_s7 + $0xb4] ss:$8 sps:$4 sm:$0xff]   ;;  %v1301_v57 = vld [vmem:[%s1416_s7 + $0xb0] ss:$8 sps:$4 sm:$0xff]  }
  0x24   : > { %632 = vmatprep.subr.bf16.mxu0 %v1230_v10  ;;  %v1298_v55 = vld [vmem:[%s1416_s7 + $0xa0] ss:$8 sps:$4 sm:$0xff]   ;;  %v1302_v58 = vld [vmem:[%s1416_s7 + $0xc4] ss:$8 sps:$4 sm:$0xff]   ;;  %v1305_v60 = vld [vmem:[%s1416_s7 + $0xd4] ss:$8 sps:$4 sm:$0xff]  }
  0x25   : > { %895 = vmatpush1.bf16.msra.mxu1 %v1277_v27  ;;  %v1304_v59 = vld [vmem:[%s1416_s7 + $0xc0] ss:$8 sps:$4 sm:$0xff]   ;;  %v1307_v61 = vld [vmem:[%s1416_s7 + $0xd0] ss:$8 sps:$4 sm:$0xff]   ;;  %v1308_v62 = vld [vmem:[%s1416_s7 + $0xe4] ss:$8 sps:$4 sm:$0xff]  }
  0x26   : > { %896 = vmatprep.subr.bf16.mxu1 %v1278_v29  ;;  %v1310_v63 = vld [vmem:[%s1416_s7 + $0xe0] ss:$8 sps:$4 sm:$0xff]   ;;  %v1311_v0 = vld [vmem:[%s1416_s7 + $0xf4] ss:$8 sps:$4 sm:$0xff]   ;;  %v1313_v1 = vld [vmem:[%s1416_s7 + $0xf0] ss:$8 sps:$4 sm:$0xff]  }
  0x27   : > { %633 = vmatpush1.bf16.msra.mxu0 %v1232_v11  ;;  %s1113_s8 = sshll.u32 %s1502_s18, 1  ;;  %v435_v3 = vshrl.u32 %v434_v2, 7  ;;  %s1190_s15 = sshll.u32 %s1502_s18, 5 }
  0x28   : > { %634 = vmatprep.subr.bf16.mxu0 %v1233_v12  ;;  %s357_s11 = scalar_lea.vmem %s1493_s2, %s1113_s8  ;;  %s375_s14 = scalar_lea.vmem %s1495_s4, %s1113_s8 }
  0x29   : > { %897 = vmatpush1.bf16.msra.mxu1 %v1280_v31  ;;  %v431_v4 = vld [vmem:[%s357_s11] sm:$0x3]  ;;  %v436_v6 = vsub.s32 0, %v435_v3  ;;  %v440_v7 = vsub.s32 2, %v435_v3  ;;  %s390_s22 = scalar_lea.vmem %s1496_s5, %s1190_s15 }
  0x2a   : > { %898 = vmatprep.subr.bf16.mxu1 %v1281_v33  ;;  %v432_v5 = vunpack.c.l.bf16 %v431_v4 }
  0x2b   : > { %635 = vmatpush1.bf16.msra.mxu0 %v1235_v13 }
  0x2c   : > { %636 = vmatprep.subr.bf16.mxu0 %v1236_v14  ;;  %v437_v8 = vrot.slane %v432_v5, %v436_v6  ;;  %v441_v9 = vrot.slane %v432_v5, %v440_v7 }
  0x2d   : > { %899 = vmatpush1.bf16.msra.mxu1 %v1283_v35 }
  0x2e   : > { %900 = vmatprep.subr.bf16.mxu1 %v1284_v37  ;;  %v447_v10 = vrot.slane %v437_v8, %v436_v6  ;;  %v451_v11 = vrot.slane %v441_v9, %v436_v6 }
  0x2f   : > { %637 = vmatpush1.bf16.msra.mxu0 %v1238_v20 }
  0x30   : > { %638 = vmatprep.subr.bf16.mxu0 %v1239_v22 }
  0x31   : > { %901 = vmatpush1.bf16.msra.mxu1 %v1286_v39 }
  0x32   : > { %902 = vmatprep.subr.bf16.mxu1 %v1287_v41 }
  0x33   : > { %639 = vmatpush1.bf16.msra.mxu0 %v1241_v24 }
  0x34   : > { %640 = vmatprep.subr.bf16.mxu0 %v1242_v26  ;;  %v707_v26 = vld [vmem:[%s375_s14] sm:$0x3] }
  0x35   : > { %903 = vmatpush1.bf16.msra.mxu1 %v1289_v43  ;;  %v708_v27 = vunpack.c.l.bf16 %v707_v26 }
  0x36   : > { %904 = vmatprep.subr.bf16.mxu1 %v1290_v45 }
  0x37   : > { %641 = vmatpush1.bf16.msra.mxu0 %v1244_v28  ;;  %v713_v28 = vrot.slane %v708_v27, %v436_v6  ;;  %v717_v29 = vrot.slane %v708_v27, %v440_v7 }
  0x38   : > { %642 = vmatprep.subr.bf16.mxu0 %v1245_v30 }
  0x39   : > { %905 = vmatpush1.bf16.msra.mxu1 %v1292_v47  ;;  %v723_v30 = vrot.slane %v713_v28, %v436_v6  ;;  %v727_v31 = vrot.slane %v717_v29, %v436_v6 }
  0x3a   : > { %906 = vmatprep.subr.bf16.mxu1 %v1293_v49 }
  0x3b   : > { %643 = vmatpush1.bf16.msra.mxu0 %v1247_v32 }
  0x3c   : > { %644 = vmatprep.subr.bf16.mxu0 %v1248_v34 }
  0x3d   : > { %907 = vmatpush1.bf16.msra.mxu1 %v1295_v51 }
  0x3e   : > { %908 = vmatprep.subr.bf16.mxu1 %v1296_v53 }
  0x3f   : > { %645 = vmatpush1.bf16.msra.mxu0 %v1250_v36 }
  0x40   : > { %646 = vmatprep.subr.bf16.mxu0 %v1251_v38 }
  0x41   : > { %909 = vmatpush1.bf16.msra.mxu1 %v1298_v55 }
  0x42   : > { %910 = vmatprep.subr.bf16.mxu1 %v1299_v56 }
  0x43   : > { %647 = vmatpush1.bf16.msra.mxu0 %v1253_v40 }
  0x44   : > { %648 = vmatprep.subr.bf16.mxu0 %v1254_v42 }
  0x45   : > { %911 = vmatpush1.bf16.msra.mxu1 %v1301_v57 }
  0x46   : > { %912 = vmatprep.subr.bf16.mxu1 %v1302_v58 }
  0x47   : > { %649 = vmatpush1.bf16.msra.mxu0 %v1256_v44 }
  0x48   : > { %650 = vmatprep.subr.bf16.mxu0 %v1257_v46 }
  0x49   : > { %913 = vmatpush1.bf16.msra.mxu1 %v1304_v59 }
  0x4a   : > { %914 = vmatprep.subr.bf16.mxu1 %v1305_v60 }
  0x4b   : > { %651 = vmatpush1.bf16.msra.mxu0 %v1259_v48 }
  0x4c   : > { %652 = vmatprep.subr.bf16.mxu0 %v1260_v50 }
  0x4d   : > { %915 = vmatpush1.bf16.msra.mxu1 %v1307_v61 }
  0x4e   : > { %916 = vmatprep.subr.bf16.mxu1 %v1308_v62 }
  0x4f   : > { %653 = vmatpush1.bf16.msra.mxu0 %v1262_v52 }
  0x51   : > { %917 = vmatpush1.bf16.msra.mxu1 %v1310_v63 }
  0x52   : > { %655 = vmatmul.mubr.bf16.vlgmr.msra.gmra.mrb[0].mxu0 %v1263_v54  ;;  %918 = vmatprep.subr.bf16.mxu1 %v1311_v0 }
  0x55   : > { %919 = vmatpush1.bf16.msra.mxu1 %v1313_v1 }
 0x125   : > { %v656_v12 = vpop.f32.mrb[0].mxu0 }
 0x126   : > { %v657_v13 = vadd.f32 %v656_v12, %v447_v10  ;;  %v658_v14 = vpop.f32.mrb[1].mxu0 }
 0x127   : > { %v659_v15 = vadd.f32 %v658_v14, %v451_v11  ;;  %v660_v16 = vpop.f32.mrb[2].mxu0 }
 0x128   : > { %v661_v17 = vadd.f32 %v660_v16, %v447_v10  ;;  %v662_v18 = vpop.f32.mrb[3].mxu0  ;;  %v665_v20 = vmax.f32 %v657_v13, 0.0 }
 0x129   : > { %v663_v19 = vadd.f32 %v662_v18, %v451_v11  ;;  %v666_v22 = vmax.f32 %v659_v15, 0.0 }
 0x12a   : > { %v667_v21 = vmax.f32 %v661_v17, 0.0 }
 0x12b   : > { %v668_v23 = vmax.f32 %v663_v19, 0.0 }
 0x12c   : > { %v669_v24 = vpack.c.bf16 %v667_v21, %v665_v20 }
 0x12d   : > { %v670_v25 = vpack.c.bf16 %v668_v23, %v666_v22 }
 0x12f   : > { %920 = vmatprep.mubr.bf16.mxu1 %v670_v25 }
 0x130   : > { %921 = vmatmul.mubr.bf16.vlgmr.msra.gmra.mrb[0].mxu1 %v669_v24 }
 0x203   : > { %v922_v32 = vpop.f32.mrb[0].mxu1 }
 0x204   : > { %v923_v33 = vadd.f32 %v922_v32, %v723_v30  ;;  %v924_v34 = vpop.f32.mrb[1].mxu1 }
 0x205   : > { %v925_v35 = vadd.f32 %v924_v34, %v727_v31  ;;  %v926_v36 = vpop.f32.mrb[2].mxu1 }
 0x206   : > { %931 = vst [vmem:[%s390_s22] sm:$0xff] %v923_v33  ;;  %v927_v37 = vadd.f32 %v926_v36, %v723_v30  ;;  %v928_v38 = vpop.f32.mrb[3].mxu1 }
 0x207   : > { %932 = vst [vmem:[%s390_s22 + $0x8] sm:$0xff] %v925_v35  ;;  %v929_v39 = vadd.f32 %v928_v38, %v727_v31 }
 0x208   : > { %933 = vst [vmem:[%s390_s22 + $0x10] sm:$0xff] %v927_v37 }
 0x209   : > { %934 = vst [vmem:[%s390_s22 + $0x18] sm:$0xff] %v929_v39 }
 0x20a PF: > { %s15_s20 = sadd.s32 1, %s1336_s20   ;;  %s1497_s18 = smov %s1332_s19 }
 0x20b   : > { %p12_p5 = scmp.ge.s32.totalorder %s15_s20, 4   ;;  %s1498_s19 = smov %s1500_s21 }
 0x20d   :  { %14 = sbr.rel (!%p12_p5) target bundleno = 2 (0x2), region = 86 }

</bundles_post_ra>
